<compile_context>
chip_gen: v6e
topology: v6e:2x2x1
jax: 0.10.0
libtpu: 0.0.40
codegen_flags: <defaults>
</compile_context>

<pallas_src>
import jax
import jax.numpy as jnp
from jax.experimental import pallas as pl
from jax.experimental.pallas import tpu as pltpu

_OUT_PAD = 8  # logits padded 2 -> 8 columns; true logits are columns [:2]
_H1, _H2 = 64, 32


def _mlp_kernel(x_ref, w1_ref, b1_ref, w2_ref, b2_ref, w3_ref, b3_ref, o_ref):
    # Layer 1: (bB, D) @ (D, 64) -> f32, bias + ReLU on the VPU.
    h1 = jnp.maximum(
        jnp.dot(x_ref[...], w1_ref[...], preferred_element_type=jnp.float32)
        + b1_ref[...], 0.0)
    # Layer 2: (bB, 64) @ (64, 32) -> f32, bias + ReLU.
    h2 = jnp.maximum(
        jnp.dot(h1, w2_ref[...], preferred_element_type=jnp.float32)
        + b2_ref[...], 0.0)
    # Layer 3: (bB, 32) @ (32, 8-padded) -> f32; narrow store (full array width).
    o_ref[...] = (
        jnp.dot(h2, w3_ref[...], preferred_element_type=jnp.float32)
        + b3_ref[...]
    ).astype(o_ref.dtype)


def _round_up(n, m):
    return (n + m - 1) // m * m


def _choose_block_b(B, D):
    """Pick a batch tile: multiple of 8, VMEM-budgeted, >=2 grid steps when possible."""
    # Per-row f32 VMEM footprint: double-buffered x + out tiles, plus h1/h2.
    per_row = 4 * (2 * D + 2 * _OUT_PAD + _H1 + _H2)
    budget = 28 * 1024 * 1024  # tile budget; leaves headroom under the 48 MiB limit
    cap = max(8, (budget // per_row) // 8 * 8)
    block_b = min(16384, cap)
    if B > 8:
        # Keep at least 2 grid steps so "parallel" can shard across v7x's 2 TCs.
        block_b = min(block_b, _round_up(-(-B // 2), 8))
    block_b = min(block_b, _round_up(B, 8))
    return max(8, block_b)


def prepare_params(params):
    """One-time param prep: f32, biases as (1, N), logits layer padded to 8 cols."""
    w3 = params["w3"].astype(jnp.float32)
    b3 = params["b3"].reshape(1, -1).astype(jnp.float32)
    w3p = jnp.zeros((w3.shape[0], _OUT_PAD), jnp.float32).at[:, : w3.shape[1]].set(w3)
    b3p = jnp.zeros((1, _OUT_PAD), jnp.float32).at[:, : b3.shape[1]].set(b3)
    return {
        "w1": params["w1"].astype(jnp.float32),
        "b1": params["b1"].reshape(1, -1).astype(jnp.float32),
        "w2": params["w2"].astype(jnp.float32),
        "b2": params["b2"].reshape(1, -1).astype(jnp.float32),
        "w3p": w3p,
        "b3p": b3p,
    }


@jax.jit
def simple_nn_forward(x, prepped):
    """Fused forward pass of SimpleNN.

    x: (B, input_size) float32
    prepped: output of prepare_params (weights as (in_features, out_features)).
    """
    B, D = x.shape
    x = x.astype(jnp.float32)

    w1, b1 = prepped["w1"], prepped["b1"]
    w2, b2 = prepped["w2"], prepped["b2"]
    w3p, b3p = prepped["w3p"], prepped["b3p"]

    block_b = _choose_block_b(B, D)
    grid = (pl.cdiv(B, block_b),)  # ragged last block handled by Pallas; no jnp.pad

    in_specs = [
        pl.BlockSpec((block_b, D), lambda i: (i, 0)),   # x streamed over the batch
        pl.BlockSpec(w1.shape, lambda i: (0, 0)),       # small weights: constant block
        pl.BlockSpec(b1.shape, lambda i: (0, 0)),
        pl.BlockSpec(w2.shape, lambda i: (0, 0)),
        pl.BlockSpec(b2.shape, lambda i: (0, 0)),
        pl.BlockSpec(w3p.shape, lambda i: (0, 0)),
        pl.BlockSpec(b3p.shape, lambda i: (0, 0)),
    ]
    out_spec = pl.BlockSpec((block_b, _OUT_PAD), lambda i: (i, 0))

    flops = 2 * B * (D * _H1 + _H1 * _H2 + _H2 * _OUT_PAD)
    bytes_accessed = (
        x.size * 4                      # x read (f32, single pass)
        + B * _OUT_PAD * 4              # trimmed output write
        + (w1.size + w2.size + w3p.size) * 4
        + (b1.size + b2.size + b3p.size) * 4
    )
    cost = pl.CostEstimate(flops=flops, transcendentals=0,
                           bytes_accessed=bytes_accessed)

    out_pad = pl.pallas_call(
        _mlp_kernel,
        out_shape=jax.ShapeDtypeStruct((B, _OUT_PAD), jnp.float32),
        grid_spec=pltpu.PrefetchScalarGridSpec(
            num_scalar_prefetch=0,
            grid=grid,
            in_specs=in_specs,
            out_specs=out_spec,
        ),
        compiler_params=pltpu.CompilerParams(
            dimension_semantics=("parallel",),
            vmem_limit_bytes=48 * 1024 * 1024,
        ),
        cost_estimate=cost,
    )(x, w1, b1, w2, b2, w3p, b3p)

    return out_pad[:, :2]


def init_params(input_size, key):
    """Deterministic init mirroring nn.Linear shapes (weights transposed to (in, out))."""
    k1, k2, k3, k4, k5, k6 = jax.random.split(key, 6)

    def uinit(k, shape, fan_in):
        bound = 1.0 / jnp.sqrt(fan_in)
        return jax.random.uniform(k, shape, jnp.float32, -bound, bound)

    return {
        "w1": uinit(k1, (input_size, 64), input_size),
        "b1": uinit(k2, (64,), input_size),
        "w2": uinit(k3, (64, 32), 64),
        "b2": uinit(k4, (32,), 64),
        "w3": uinit(k5, (32, 2), 32),
        "b3": uinit(k6, (2,), 32),
    }


if __name__ == "__main__":
    key = jax.random.PRNGKey(0)
    kx, kp = jax.random.split(key)

    batch = 19        # deliberately not a multiple of 8: exercises the ragged last block
    input_size = 32

    x = jax.random.normal(kx, (batch, input_size), dtype=jnp.float32)
    params = init_params(input_size, kp)
    prepped = prepare_params(params)

    out = simple_nn_forward(x, prepped)
    out = jax.block_until_ready(out)
    assert out.shape == (batch, 2)

    # Pure-f32 reference matching the PyTorch module math.
    h1 = jnp.maximum(x @ params["w1"] + params["b1"], 0.0)
    h2 = jnp.maximum(h1 @ params["w2"] + params["b2"], 0.0)
    ref = h2 @ params["w3"] + params["b3"]
    assert jnp.allclose(out, ref, atol=5e-2, rtol=5e-2), (
        float(jnp.max(jnp.abs(out - ref))))

    print("KERNEL_OK")
</pallas_src>

<mosaic_0001>
module attributes {stable_mosaic.version = 11 : i64} {
  func.func @_mlp_kernel(%arg0: i32, %arg1: memref<16x32xf32, #tpu.memory_space<vmem>>, %arg2: memref<32x64xf32, #tpu.memory_space<vmem>>, %arg3: memref<1x64xf32, #tpu.memory_space<vmem>>, %arg4: memref<64x32xf32, #tpu.memory_space<vmem>>, %arg5: memref<1x32xf32, #tpu.memory_space<vmem>>, %arg6: memref<32x8xf32, #tpu.memory_space<vmem>>, %arg7: memref<1x8xf32, #tpu.memory_space<vmem>>, %arg8: memref<16x8xf32, #tpu.memory_space<vmem>>) attributes {dimension_semantics = [#tpu.dimension_semantics<parallel>], iteration_bounds = array<i64: 2>, scalar_prefetch = 0 : i64, scratch_operands = 0 : i64, tpu.core_type = #tpu.core_type<tc>, window_params = [{transform_indices = @transform_0, window_bounds = array<i64: 16, 32>}, {pipeline_mode = #tpu.pipeline_mode<synchronous>, transform_indices = @transform_1, window_bounds = array<i64: 32, 64>}, {pipeline_mode = #tpu.pipeline_mode<synchronous>, transform_indices = @transform_2, window_bounds = array<i64: 1, 64>}, {pipeline_mode = #tpu.pipeline_mode<synchronous>, transform_indices = @transform_3, window_bounds = array<i64: 64, 32>}, {pipeline_mode = #tpu.pipeline_mode<synchronous>, transform_indices = @transform_4, window_bounds = array<i64: 1, 32>}, {pipeline_mode = #tpu.pipeline_mode<synchronous>, transform_indices = @transform_5, window_bounds = array<i64: 32, 8>}, {pipeline_mode = #tpu.pipeline_mode<synchronous>, transform_indices = @transform_6, window_bounds = array<i64: 1, 8>}, {transform_indices = @transform_7, window_bounds = array<i64: 16, 8>}]} {
    %c0 = arith.constant 0 : index
    %c0_0 = arith.constant 0 : index
    %0 = vector.load %arg1[%c0, %c0_0] : memref<16x32xf32, #tpu.memory_space<vmem>>, vector<16x32xf32>
    %c0_1 = arith.constant 0 : index
    %c0_2 = arith.constant 0 : index
    %1 = vector.load %arg2[%c0_1, %c0_2] : memref<32x64xf32, #tpu.memory_space<vmem>>, vector<32x64xf32>
    %cst = arith.constant dense<0.000000e+00> : vector<16x64xf32>
    %2 = tpu.matmul %0, %1, %cst {dimension_numbers = #tpu.dot_dimension_numbers<[1], [0], [0], [1], [0, 0, 1, 1], [], []>} : vector<16x32xf32>, vector<32x64xf32>, vector<16x64xf32> -> vector<16x64xf32>
    %c0_3 = arith.constant 0 : index
    %c0_4 = arith.constant 0 : index
    %3 = vector.load %arg3[%c0_3, %c0_4] : memref<1x64xf32, #tpu.memory_space<vmem>>, vector<1x64xf32>
    %4 = vector.broadcast %3 : vector<1x64xf32> to vector<16x64xf32>
    %5 = arith.addf %2, %4 : vector<16x64xf32>
    %cst_5 = arith.constant 0.000000e+00 : f32
    %6 = vector.broadcast %cst_5 : f32 to vector<16x64xf32>
    %7 = arith.maximumf %5, %6 : vector<16x64xf32>
    %c0_6 = arith.constant 0 : index
    %c0_7 = arith.constant 0 : index
    %8 = vector.load %arg4[%c0_6, %c0_7] : memref<64x32xf32, #tpu.memory_space<vmem>>, vector<64x32xf32>
    %cst_8 = arith.constant dense<0.000000e+00> : vector<16x32xf32>
    %9 = tpu.matmul %7, %8, %cst_8 {dimension_numbers = #tpu.dot_dimension_numbers<[1], [0], [0], [1], [0, 0, 1, 1], [], []>} : vector<16x64xf32>, vector<64x32xf32>, vector<16x32xf32> -> vector<16x32xf32>
    %c0_9 = arith.constant 0 : index
    %c0_10 = arith.constant 0 : index
    %10 = vector.load %arg5[%c0_9, %c0_10] : memref<1x32xf32, #tpu.memory_space<vmem>>, vector<1x32xf32>
    %11 = vector.broadcast %10 : vector<1x32xf32> to vector<16x32xf32>
    %12 = arith.addf %9, %11 : vector<16x32xf32>
    %cst_11 = arith.constant 0.000000e+00 : f32
    %13 = vector.broadcast %cst_11 : f32 to vector<16x32xf32>
    %14 = arith.maximumf %12, %13 : vector<16x32xf32>
    %c0_12 = arith.constant 0 : index
    %c0_13 = arith.constant 0 : index
    %15 = vector.load %arg6[%c0_12, %c0_13] : memref<32x8xf32, #tpu.memory_space<vmem>>, vector<32x8xf32>
    %cst_14 = arith.constant dense<0.000000e+00> : vector<16x8xf32>
    %16 = tpu.matmul %14, %15, %cst_14 {dimension_numbers = #tpu.dot_dimension_numbers<[1], [0], [0], [1], [0, 0, 1, 1], [], []>} : vector<16x32xf32>, vector<32x8xf32>, vector<16x8xf32> -> vector<16x8xf32>
    %c0_15 = arith.constant 0 : index
    %c0_16 = arith.constant 0 : index
    %17 = vector.load %arg7[%c0_15, %c0_16] : memref<1x8xf32, #tpu.memory_space<vmem>>, vector<1x8xf32>
    %18 = vector.broadcast %17 : vector<1x8xf32> to vector<16x8xf32>
    %19 = arith.addf %16, %18 : vector<16x8xf32>
    %c0_17 = arith.constant 0 : index
    %c0_18 = arith.constant 0 : index
    %20 = vector.load %arg8[%c0_17, %c0_18] : memref<16x8xf32, #tpu.memory_space<vmem>>, vector<16x8xf32>
    tpu.vector_store %arg8[%c0_17, %c0_18], %19 {strides = array<i32>} : memref<16x8xf32, #tpu.memory_space<vmem>>, vector<16x8xf32>,
    return
  }
  func.func @transform_0(%arg0: i32) -> (i32, i32) {
    %c0_i32 = arith.constant 0 : i32
    %c0_i32_0 = arith.constant 0 : i32
    return %arg0, %c0_i32 : i32, i32
  }
  func.func @transform_1(%arg0: i32) -> (i32, i32) {
    %c0_i32 = arith.constant 0 : i32
    %c0_i32_0 = arith.constant 0 : i32
    %c0_i32_1 = arith.constant 0 : i32
    return %c0_i32, %c0_i32_0 : i32, i32
  }
  func.func @transform_2(%arg0: i32) -> (i32, i32) {
    %c0_i32 = arith.constant 0 : i32
    %c0_i32_0 = arith.constant 0 : i32
    %c0_i32_1 = arith.constant 0 : i32
    return %c0_i32, %c0_i32_0 : i32, i32
  }
  func.func @transform_3(%arg0: i32) -> (i32, i32) {
    %c0_i32 = arith.constant 0 : i32
    %c0_i32_0 = arith.constant 0 : i32
    %c0_i32_1 = arith.constant 0 : i32
    return %c0_i32, %c0_i32_0 : i32, i32
  }
  func.func @transform_4(%arg0: i32) -> (i32, i32) {
    %c0_i32 = arith.constant 0 : i32
    %c0_i32_0 = arith.constant 0 : i32
    %c0_i32_1 = arith.constant 0 : i32
    return %c0_i32, %c0_i32_0 : i32, i32
  }
  func.func @transform_5(%arg0: i32) -> (i32, i32) {
    %c0_i32 = arith.constant 0 : i32
    %c0_i32_0 = arith.constant 0 : i32
    %c0_i32_1 = arith.constant 0 : i32
    return %c0_i32, %c0_i32_0 : i32, i32
  }
  func.func @transform_6(%arg0: i32) -> (i32, i32) {
    %c0_i32 = arith.constant 0 : i32
    %c0_i32_0 = arith.constant 0 : i32
    %c0_i32_1 = arith.constant 0 : i32
    return %c0_i32, %c0_i32_0 : i32, i32
  }
  func.func @transform_7(%arg0: i32) -> (i32, i32) {
    %c0_i32 = arith.constant 0 : i32
    %c0_i32_0 = arith.constant 0 : i32
    return %arg0, %c0_i32 : i32, i32
  }
}

</mosaic_0001>

<bundles_post_ra>
// kernel: simple_nn_forward.1
= control target key start
LH: loop header
LB: loop body
LE: loop exit
PB: predicated region body
PF: predicated region fallthrough
CT: control target
= control target key end

     0   :  { %s1126_s24 = smov 0   ;;  %s1128_s25 = smov 0   ;;  %s1270_s0 = inlined_call_operand.vmem [shape: f32[19,32], index: 0, kind: input, shape index: {}]   ;;  %s1271_s1 = inlined_call_operand.vmem [shape: f32[32,64], index: 1, kind: input, shape index: {}]   ;;  %s1272_s2 = inlined_call_operand.vmem [shape: f32[1,64], index: 2, kind: input, shape index: {}]   ;;  %s1273_s3 = inlined_call_operand.vmem [shape: f32[64,32], index: 3, kind: input, shape index: {}]   ;;  %s1274_s4 = inlined_call_operand.vmem [shape: f32[1,32], index: 4, kind: input, shape index: {}]   ;;  %s1275_s5 = inlined_call_operand.vmem [shape: f32[32,8], index: 5, kind: input, shape index: {}]   ;;  %s1276_s6 = inlined_call_operand.vmem [shape: f32[1,8], index: 6, kind: input, shape index: {}]   ;;  %s1277_s7 = inlined_call_operand.vmem [shape: f32[19,8], index: 7, kind: output, shape index: {}]  }
   0x1   :  { %s1130_s26 = smov 0  }
   0x2 LB: > { %s1139_s27 = sadd.s32 4294967295, %s1052_s26   ;;  %s1141_s28 = sadd.s32 1, %s1052_s26   ;;  %s1052_s26 = sphi %s1130_s26, %s1281_s26   ;;  %s1048_s25 = sphi %s1128_s25, %s1280_s25   ;;  %s1044_s24 = sphi %s1126_s24, %s1279_s24  }
   0x3   : > { %s173_s29 = ssub.s32 %s1052_s26, %s1141_s28  ;;  %s176_s30 = sadd.s32 1, %s1048_s25 }
   0x4   : > { %p174_p0 = scmp.eq.s32.totalorder %s173_s29, 0  ;;  %p186_p1 = scmp.ne.s32.totalorder %s1048_s25, %s1044_s24 }
   0x5   : > { %p187_p2 = scmp.eq.s32.totalorder %s1139_s27, 1  ;;  %p814_p3 = scmp.ge.s32.totalorder %s1052_s26, 1 }
   0x6   : > { %s1149_s8 = scalar_select %p174_p0, %s1048_s25, %s176_s30  }
   0x7   : > { %p1151_p4 = por %p187_p2, %p186_p1  ;;  %p246_p5 = scmp.lt.s32.totalorder %s1052_s26, 3 }
   0x9   : > { %p247_p6 = pnand %p814_p3, %p246_p5 }
   0xa   : > { %s1162_s14 = sshll.u32 (!%p247_p6), %s1139_s27, 1  ;;  %s278_s20 = sand.u32 (!%p247_p6), 1, %s1044_s24  }
   0xb   : > { %250 = sbr.rel (%p247_p6) target bundleno = 662 (0x296), region = 48  ;;  %p286_p7 = scmp.lt.s32.totalorder (!%p247_p6), %s1162_s14, 2 }
  0x10   : > { %v305_v0 = vld [vmem:[%s1271_s1 + $0x18] sm:$0xff]  ;;  %v304_v1 = vld [vmem:[%s1271_s1 + $0x10] sm:$0xff]  ;;  %v303_v4 = vld [vmem:[%s1271_s1 + $0x8] sm:$0xff]  ;;  %s287_s21 = scalar_select %p286_p7, %s1162_s14, 2  ;;  %vm313_vm0 = vcmask 261120   ;;  %vm412_vm1 = vcmask 523264  }
  0x11   : > { %869 = vmatprep.subr.mxu0 %v305_v0  ;;  %v404_v2 = vld [vmem:[%s1273_s3 + $0x38] sm:$0xff]  ;;  %v403_v3 = vld [vmem:[%s1273_s3 + $0x30] sm:$0xff]  ;;  %v402_v5 = vld [vmem:[%s1273_s3 + $0x28] sm:$0xff]  ;;  %vm588_vm2 = vcmask 64512   ;;  %s599_s24 = ssub.s32 (%p1151_p4), 3, %s1162_s14  ;;  %s844_s29 = sshll.u32 (%p1151_p4), %s1139_s27, 4 }
  0x12   : > { %870 = vmatpush3.msra.mxu0 %v305_v0  ;;  %880 = vmatprep.subr.mxu1 %v404_v2  ;;  %v302_v6 = vld [vmem:[%s1271_s1] sm:$0xff]  ;;  %s817_s30 = sshll.u32 %s287_s21, 3  ;;  %v400_v10 = vld [vmem:[%s1273_s3 + $0x18] sm:$0xff]  ;;  %v399_v11 = vld [vmem:[%s1273_s3 + $0x10] sm:$0xff]  ;;  %s815_s21 = sshll.u32 %s278_s20, 4 }
  0x13   : > { %871 = vmatprep.subr.mxu0 %v304_v1  ;;  %881 = vmatpush3.msra.mxu1 %v404_v2  ;;  %s289_s12 = scalar_lea.vmem %s1270_s0, %s817_s30  ;;  %v401_v7 = vld [vmem:[%s1273_s3 + $0x20] sm:$0xff]  ;;  %v398_v12 = vld [vmem:[%s1273_s3 + $0x8] sm:$0xff]  ;;  %v499_v21 = vld [vmem:[%s1275_s5 + $0x18] sm:$0xff]  ;;  %s1225_s26 = scalar_lea.vmem [#allocation2], %s815_s21  }
  0x14   : > { %872 = vmatpush3.msra.mxu0 %v304_v1  ;;  %882 = vmatprep.subr.mxu1 %v403_v3  ;;  %v300_v8 = vld [vmem:[%s289_s12] sm:$0xff]  ;;  %v301_v9 = vld [vmem:[%s289_s12 + $0x8] sm:$0xff]  ;;  %v498_v22 = vld [vmem:[%s1275_s5 + $0x10] sm:$0xff]  ;;  %p600_p8 = scmp.lt.s32.totalorder (%p1151_p4), %s599_s24, 2  ;;  %s1236_s11 = scalar_lea.vmem (%p1151_p4), %s1277_s7, %s844_s29  }
  0x15   : > { %873 = vmatprep.subr.mxu0 %v303_v4  ;;  %883 = vmatpush3.msra.mxu1 %v403_v3  ;;  %v397_v13 = vld [vmem:[%s1273_s3] sm:$0xff]  ;;  %v497_v23 = vld [vmem:[%s1275_s5 + $0x8] sm:$0xff] }
  0x16   : > { %874 = vmatpush3.msra.mxu0 %v303_v4  ;;  %884 = vmatprep.subr.mxu1 %v402_v5  ;;  %v818_v14 = vld [vmem:[%s1272_s2] ss:$0 sm:$0xff] }
  0x17   : > { %875 = vmatprep.subr.mxu0 %v302_v6  ;;  %885 = vmatpush3.msra.mxu1 %v402_v5  ;;  %v496_v24 = vld [vmem:[%s1275_s5] sm:$0xff] }
  0x18   : > { %876 = vmatpush3.msra.mxu0 %v302_v6  ;;  %877 = vmatprep.mubr.msk.f32.mxu0 %vm313_vm0, %v300_v8  ;;  %v821_v25 = vld [vmem:[%s1274_s4] ss:$0 sm:$0xff] }
  0x19   : > { %878 = vmatmul.mubr.msk.f32.vlgmr.msra.gmra.mxu0 %vm313_vm0, %v301_v9  ;;  %886 = vmatprep.subr.mxu1 %v401_v7  ;;  %v824_v32 = vld [vmem:[%s1276_s6] ss:$0 sm:$0xff] }
  0x1a   : > { %887 = vmatpush3.msra.mxu1 %v401_v7  ;;  %899 = vmatprep.subr.mxu0 %v499_v21 }
  0x1b   : > { %888 = vmatprep.subr.mxu1 %v400_v10  ;;  %900 = vmatpush3.msra.mxu0 %v499_v21 }
  0x1c   : > { %889 = vmatpush3.msra.mxu1 %v400_v10  ;;  %901 = vmatprep.subr.mxu0 %v498_v22 }
  0x1d   : > { %890 = vmatprep.subr.mxu1 %v399_v11  ;;  %902 = vmatpush3.msra.mxu0 %v498_v22 }
  0x1e   : > { %891 = vmatpush3.msra.mxu1 %v399_v11  ;;  %903 = vmatprep.subr.mxu0 %v497_v23 }
  0x1f   : > { %892 = vmatprep.subr.mxu1 %v398_v12  ;;  %904 = vmatpush3.msra.mxu0 %v497_v23 }
  0x20   : > { %893 = vmatpush3.msra.mxu1 %v398_v12  ;;  %905 = vmatprep.subr.mxu0 %v496_v24 }
  0x21   : > { %894 = vmatprep.subr.mxu1 %v397_v13  ;;  %906 = vmatpush3.msra.mxu0 %v496_v24 }
  0x22   : > { %895 = vmatpush3.msra.mxu1 %v397_v13 }
  0xd9   : > { %v879_v15 = vpop.f32.mrf.mxu0 }
  0xda   : > { %v392_v16 = vadd.f32 %v879_v15, %v818_v14 }
  0xdb   : > { %v386_v17 = vpop.f32.mrf.mxu0 }
  0xdc   : > { %v387_v18 = vadd.f32 %v818_v14, %v386_v17  ;;  %v396_v20 = vmax.f32 %v392_v16, 0.0 }
  0xde   : > { %v395_v19 = vmax.f32 %v387_v18, 0.0 }
  0xe0   : > { %896 = vmatprep.mubr.msk.f32.mxu1 %vm412_vm1, %v395_v19 }
  0xe1   : > { %897 = vmatmul.mubr.msk.f32.vlgmr.msra.gmra.mxu1 %vm412_vm1, %v396_v20 }
 0x1a1   : > { %v898_v26 = vpop.f32.mrf.mxu1 }
 0x1a2   : > { %v491_v27 = vadd.f32 %v898_v26, %v821_v25 }
 0x1a3   : > { %v485_v28 = vpop.f32.mrf.mxu1 }
 0x1a4   : > { %v486_v29 = vadd.f32 %v821_v25, %v485_v28  ;;  %v495_v31 = vmax.f32 %v491_v27, 0.0 }
 0x1a6   : > { %v494_v30 = vmax.f32 %v486_v29, 0.0 }
 0x1a8   : > { %907 = vmatprep.mubr.msk.f32.mxu0 %vm313_vm0, %v494_v30 }
 0x1a9   : > { %908 = vmatmul.mubr.msk.f32.vlgmr.msra.gmra.mxu0 %vm313_vm0, %v495_v31 }
 0x269   : > { %v909_v33 = vpop.f32.mrf.mxu0 }
 0x26a   : > { %v585_v34 = vadd.f32 %v909_v33, %v824_v32  ;;  %597 = sbr.rel (!%p1151_p4) target bundleno = 662 (0x296), region = 52 }
 0x26b   : > { %v579_v35 = vpop.f32.mrf.mxu0 }
 0x26c   : > { %590 = vst.msk [vmem:[%s1225_s26 + $0x8] sm:$0xff] %vm588_vm2, %v585_v34  ;;  %v580_v36 = vadd.f32 %v824_v32, %v579_v35 }
 0x26e   : > { %589 = vst.msk [vmem:[%s1225_s26] sm:$0xff] %vm588_vm2, %v580_v36 }
 0x26f   : > { %s1283_s24 = smov (!%p600_p8, %s599_s24), 2 }
 0x270   : > { %s829_s12 = sshll.u32 %s1283_s24, 7 }
 0x271   : > { %p832_p9 = scmp.eq.s32.totalorder %s829_s12, 0 }
 0x272   : > { %s1242_s13 = sshrl.u32 (!%p832_p9), %s1283_s24, 1 }
 0x273   : > { %608 = sbr.rel (%p832_p9) target bundleno = 662 (0x296), region = 56  ;;  %p833_p10 = scmp.le.s32.totalorder (!%p832_p9), %s1242_s13, 0 }
 0x278   : > { %767 = sbr.rel (%p833_p10) target bundleno = 645 (0x285), region = 132  ;;  %s1054_s27 = smov (!%p833_p10), %s1236_s11  }
 0x279   : > { %s1058_s9 = smov (!%p833_p10), %s1225_s26   ;;  %s1062_s14 = smov (!%p833_p10), 0  }
 0x27a   : > { %s1066_s15 = smov (!%p833_p10), 0  }
 0x27d LB: >> { %v673_v37 = vld [vmem:[%s1060_s9] sm:$0xff]  ;;  %v675_v38 = vld [vmem:[%s1060_s9 + $0x8] sm:$0xff]  ;;  %s677_s16 = sadd.s32 1, %s1064_s14  ;;  %s667_s15 = sadd.s32 1, %s1068_s15   ;;  %s1068_s15 = sphi %s1066_s15, %s667_s15   ;;  %s1064_s14 = sphi %s1062_s14, %s1063_s14   ;;  %s1060_s9 = sphi %s1058_s9, %s682_s9   ;;  %s1056_s27 = sphi %s1054_s27, %s683_s27  }
 0x27e   : >> { %674 = vst [vmem:[%s1056_s27] sm:$0xff] %v673_v37  ;;  %676 = vst [vmem:[%s1056_s27 + $0x8] sm:$0xff] %v675_v38  ;;  %p678_p11 = scmp.ge.s32.totalorder %s677_s16, %s1242_s13  ;;  %p666_p12 = scmp.ge.s32.totalorder %s667_s15, %s1242_s13 }
 0x280   : >> { %s1285_s16 = smov (%p678_p11, %s677_s16), 0  ;;  %669 = sbr.rel (!%p666_p12) target bundleno = 637 (0x27d), region = 138 }
 0x281   : >> { %s834_s17 = sshll.u32 %s1285_s16, 4  ;;  %s1063_s14 = smov %s1285_s16  }
 0x282   : >> { %s682_s9 = scalar_lea.vmem %s1225_s26, %s834_s17 [#allocation2]   ;;  %s683_s27 = scalar_lea.vmem %s1236_s11, %s834_s17  }
 0x285 PF: > { %s1252_s18 = sand.u32 1, %s1283_s24   ;;  %s845_s19 = sshll.u32 %s1242_s13, 4 }
 0x286   : > { %s688_s20 = scalar_lea.vmem %s1225_s26, %s845_s19 [#allocation2]   ;;  %s690_s21 = scalar_lea.vmem %s1236_s11, %s845_s19  }
 0x287   : > { %p839_p13 = scmp.le.s32.totalorder %s1252_s18, 0 }
 0x288   : > { %s1070_s22 = smov (!%p839_p13), %s690_s21   ;;  %s1074_s23 = smov (!%p839_p13), %s688_s20  }
 0x289   : > { %781 = sbr.rel (%p839_p13) target bundleno = 662 (0x296), region = 143  ;;  %s1078_s29 = smov (!%p839_p13), 0  }
 0x28a   : > { %s1082_s30 = smov (!%p839_p13), 0  }
 0x28e LB: >> { %v700_v39 = vld [vmem:[%s1076_s23] sm:$0xff]  ;;  %s702_s24 = sadd.s32 1, %s1080_s29  ;;  %s694_s30 = sadd.s32 1, %s1084_s30   ;;  %s1084_s30 = sphi %s1082_s30, %s694_s30   ;;  %s1080_s29 = sphi %s1078_s29, %s1079_s29   ;;  %s1076_s23 = sphi %s1074_s23, %s707_s23   ;;  %s1072_s22 = sphi %s1070_s22, %s708_s22  }
 0x28f   : >> { %701 = vst [vmem:[%s1072_s22] sm:$0xff] %v700_v39  ;;  %p703_p0 = scmp.ge.s32.totalorder %s702_s24, %s1252_s18  ;;  %p693_p1 = scmp.ge.s32.totalorder %s694_s30, %s1252_s18 }
 0x291   : >> { %s1287_s24 = smov (%p703_p0, %s702_s24), 0  ;;  %696 = sbr.rel (!%p693_p1) target bundleno = 654 (0x28e), region = 149 }
 0x292   : >> { %s840_s26 = sshll.u32 %s1287_s24, 3  ;;  %s1079_s29 = smov %s1287_s24  }
 0x293   : >> { %s707_s23 = scalar_lea.vmem %s688_s20, %s840_s26 [#allocation2]   ;;  %s708_s22 = scalar_lea.vmem %s690_s21, %s840_s26  }
 0x296 PF: > { %p14_p2 = scmp.ge.s32.totalorder %s1141_s28, 4   ;;  %s1279_s24 = smov %s1048_s25 }
 0x297   : > { %s1280_s25 = smov %s1149_s8  ;;  %s1281_s26 = smov %s1141_s28 }
 0x298   :  { %16 = sbr.rel (!%p14_p2) target bundleno = 2 (0x2), region = 160 }

</bundles_post_ra>
